<compile_context>
chip_gen: v7x
topology: tpu7x:2x2x1
jax: 0.10.0
libtpu: 0.0.40
codegen_flags: <defaults>
</compile_context>

<pallas_src>
import functools

import jax
import jax.numpy as jnp
from jax import lax
from jax.experimental import pallas as pl
from jax.experimental.pallas import tpu as pltpu


def _conv_bn_relu_kernel(x_ref, w_ref, b_ref, o_ref, xflat, *,
                         H, W, Wp, M_pad, Cin, NB):
    """Processes NB images per grid step.

    x_ref : (NB, Cin, H, W)        f32  raw NCHW images (cast to bf16 in-kernel)
    w_ref : (Cout_p, 9*Cin_p)      bf16 conv weights with BN scale folded in
    b_ref : (Cout_p, 1)            f32  folded BN bias
    o_ref : (NB, Cout_p, M_pad)    bf16 "wide" output (H*(W+2) cols + lane padding)
    xflat : (NB, Cin_p, L)         bf16 VMEM scratch, flat spatially-padded images
    """
    # Zero the scratch every step (padding rows/cols + zero channels); keeps grid steps
    # fully independent so the "parallel" dimension semantics are safe.  Tiny VMEM cost.
    xflat[...] = jnp.zeros_like(xflat)

    # Scatter the raw image rows into the flat padded layout (VMEM-only, no HBM pass).
    # Padded row r lives at flat [r*Wp, (r+1)*Wp); image row h goes to padded row h+1,
    # cols 1..W.  Everything else stays zero.
    for b in range(NB):
        for h in range(H):
            start = (h + 1) * Wp + 1
            xflat[b, :Cin, start:start + W] = x_ref[b, :, h, :].astype(xflat.dtype)

    w = w_ref[...]          # (Cout_p, 9*Cin_p) bf16
    bias = b_ref[...]       # (Cout_p, 1)       f32
    cin_p = xflat.shape[1]

    for b in range(NB):
        # im2col via 9 lane-offset slices of the flat padded image.  Each tap group is a
        # full Cin_p sublane group, so the axis-0 concat needs no sublane relayout.
        taps = []
        for kh in range(3):
            for kw in range(3):
                off = kh * Wp + kw
                taps.append(xflat[b, :, off:off + M_pad])          # (Cin_p, M_pad)
        lhs = jnp.concatenate(taps, axis=0)                        # (9*Cin_p, M_pad)
        del cin_p  # (documentation only)

        # Single MXU matmul per image, f32 accumulation.
        acc = jnp.dot(w, lhs, preferred_element_type=jnp.float32)  # (Cout_p, M_pad) f32

        # Folded-BN bias + ReLU epilogue; lane-dense bf16 store.
        o_ref[b] = jnp.maximum(acc + bias, 0.0).astype(o_ref.dtype)
        cin_p = xflat.shape[1]


def conv_bn_relu(x_nchw, weight, gamma, beta, running_mean, running_var, eps=1e-5):
    """Forward pass equivalent to ConvBNReLU.forward (BN in eval / running-stats mode)."""
    N, Cin, H, W = x_nchw.shape
    Cout = weight.shape[0]

    Wp = W + 2                                   # padded width
    M = H * Wp                                   # "wide" flattened output length / image
    M_pad = ((M + 127) // 128) * 128             # lane-dense (multiple of 128) output
    L = M_pad + 2 * Wp + 2                       # flat padded image length (covers max tap)

    Cin_p = max(16, ((Cin + 15) // 16) * 16)     # bf16 sublane-tile multiple (zero chans)
    Cout_p = ((Cout + 7) // 8) * 8

    # --- fold BN (eval semantics) into the conv ---
    scale = gamma / jnp.sqrt(running_var + eps)                      # (Cout,)
    bias = beta - running_mean * scale                               # (Cout,)

    # (Cout, Cin, 3, 3) -> (Cout, 3, 3, Cin_p) -> (Cout, 9*Cin_p); fold scale; bf16.
    w_t = jnp.transpose(weight, (0, 2, 3, 1))
    w_t = jnp.pad(w_t, ((0, 0), (0, 0), (0, 0), (0, Cin_p - Cin)))
    w_mat = w_t.reshape(Cout, 9 * Cin_p) * scale[:, None]
    w_mat = jnp.pad(w_mat, ((0, Cout_p - Cout), (0, 0))).astype(jnp.bfloat16)
    bias2d = jnp.pad(bias, ((0, Cout_p - Cout),)).reshape(Cout_p, 1).astype(jnp.float32)

    # Images per grid step: a divisor of N that keeps >= 2 steps (megacore) when possible.
    NB = 1
    for d in range(min(N, 8), 0, -1):
        if N % d == 0 and N // d >= 2:
            NB = d
            break
    grid = (N // NB,)

    kernel = functools.partial(_conv_bn_relu_kernel, H=H, W=W, Wp=Wp, M_pad=M_pad,
                               Cin=Cin, NB=NB)

    bytes_accessed = (N * Cin * H * W * 4          # f32 input (read once, no pre-pass)
                      + Cout_p * 9 * Cin_p * 2     # bf16 weights
                      + Cout_p * 4                 # f32 bias
                      + N * Cout_p * M_pad * 2)    # bf16 output
    cost = pl.CostEstimate(flops=2 * N * H * W * Cout * Cin * 9,
                           transcendentals=0,
                           bytes_accessed=bytes_accessed)

    out_wide = pl.pallas_call(
        kernel,
        out_shape=jax.ShapeDtypeStruct((N, Cout_p, M_pad), jnp.bfloat16),
        grid_spec=pltpu.PrefetchScalarGridSpec(
            num_scalar_prefetch=0,
            grid=grid,
            in_specs=[
                pl.BlockSpec((NB, Cin, H, W), lambda g: (g, 0, 0, 0)),
                pl.BlockSpec((Cout_p, 9 * Cin_p), lambda g: (0, 0)),
                pl.BlockSpec((Cout_p, 1), lambda g: (0, 0)),
            ],
            out_specs=pl.BlockSpec((NB, Cout_p, M_pad), lambda g: (g, 0, 0)),
            scratch_shapes=[pltpu.VMEM((NB, Cin_p, L), jnp.bfloat16)],
        ),
        compiler_params=pltpu.CompilerParams(
            dimension_semantics=("parallel",)),
        cost_estimate=cost,
    )(x_nchw, w_mat, bias2d)

    # Crop the wide bf16 slab -> (N, Cout, H, W) f32 (single fused slice+reshape+cast).
    out = out_wide[:, :Cout, :M].reshape(N, Cout, H, Wp)[..., :W].astype(jnp.float32)
    return out


def reference(x_nchw, weight, gamma, beta, running_mean, running_var, eps=1e-5):
    """Pure-JAX reference (lax conv + eval-mode BN + ReLU) for validation."""
    y = lax.conv_general_dilated(
        x_nchw, weight, window_strides=(1, 1), padding=((1, 1), (1, 1)),
        dimension_numbers=("NCHW", "OIHW", "NCHW"),
        precision=lax.Precision.HIGHEST)
    inv_std = 1.0 / jnp.sqrt(running_var + eps)
    y = (y - running_mean[None, :, None, None]) * (gamma * inv_std)[None, :, None, None] \
        + beta[None, :, None, None]
    return jnp.maximum(y, 0.0)


if __name__ == "__main__":
    # Small shapes consistent with the module: in_chan=4, out_chan=8, ks=3, stride=1, pad=1.
    N, Cin, Cout, H, W = 2, 4, 8, 16, 16

    key = jax.random.PRNGKey(0)
    kx, kw, kg, kb, km, kv = jax.random.split(key, 6)

    x = jax.random.normal(kx, (N, Cin, H, W), jnp.float32)

    # Deterministic "kaiming_normal_(a=1)" init: std = sqrt(2/(1+a^2)/fan_in) = sqrt(1/fan_in)
    fan_in = Cin * 3 * 3
    w = jax.random.normal(kw, (Cout, Cin, 3, 3), jnp.float32) * (1.0 / fan_in) ** 0.5

    # Non-trivial BN parameters (eval / running-stat semantics).
    gamma = 1.0 + 0.1 * jax.random.normal(kg, (Cout,), jnp.float32)
    beta = 0.1 * jax.random.normal(kb, (Cout,), jnp.float32)
    running_mean = 0.1 * jax.random.normal(km, (Cout,), jnp.float32)
    running_var = 1.0 + 0.1 * jax.random.uniform(kv, (Cout,), jnp.float32)

    out = jax.jit(conv_bn_relu)(x, w, gamma, beta, running_mean, running_var)
    out = jax.block_until_ready(out)
    assert out.shape == (N, Cout, H, W)

    # Compare against an f32 reference fed with bf16-rounded inputs (the kernel casts x
    # and the folded weights to bf16; accumulation stays f32, output is bf16).
    x_q = x.astype(jnp.bfloat16).astype(jnp.float32)
    w_q = w.astype(jnp.bfloat16).astype(jnp.float32)
    ref = reference(x_q, w_q, gamma, beta, running_mean, running_var)
    assert jnp.allclose(out, ref, atol=3e-2, rtol=3e-2), "mismatch vs. JAX reference"

    print("KERNEL_OK")
</pallas_src>

<mosaic_0001>
module attributes {stable_mosaic.version = 11 : i64} {
  func.func @_conv_bn_relu_kernel(%arg0: i32, %arg1: memref<1x4x16x16xf32, #tpu.memory_space<vmem>>, %arg2: memref<8x144xbf16, #tpu.memory_space<vmem>>, %arg3: memref<8x1xf32, #tpu.memory_space<vmem>>, %arg4: memref<1x8x384xbf16, #tpu.memory_space<vmem>>, %arg5: memref<1x16x422xbf16, #tpu.memory_space<vmem>>) attributes {dimension_semantics = [#tpu.dimension_semantics<parallel>], iteration_bounds = array<i64: 2>, scalar_prefetch = 0 : i64, scratch_operands = 1 : i64, tpu.core_type = #tpu.core_type<tc>, window_params = [{transform_indices = @transform_0, window_bounds = array<i64: 1, 4, 16, 16>}, {pipeline_mode = #tpu.pipeline_mode<synchronous>, transform_indices = @transform_1, window_bounds = array<i64: 8, 144>}, {pipeline_mode = #tpu.pipeline_mode<synchronous>, transform_indices = @transform_2, window_bounds = array<i64: 8, 1>}, {transform_indices = @transform_3, window_bounds = array<i64: 1, 8, 384>}]} {
    %cst = arith.constant 0.000000e+00 : bf16
    %0 = vector.broadcast %cst : bf16 to vector<1x16x422xbf16>
    %c0 = arith.constant 0 : index
    %c0_0 = arith.constant 0 : index
    %c0_1 = arith.constant 0 : index
    %1 = vector.load %arg5[%c0, %c0_0, %c0_1] : memref<1x16x422xbf16, #tpu.memory_space<vmem>>, vector<1x16x422xbf16>
    tpu.vector_store %arg5[%c0, %c0_0, %c0_1], %0 {strides = array<i32>} : memref<1x16x422xbf16, #tpu.memory_space<vmem>>, vector<1x16x422xbf16>,
    %c0_2 = arith.constant 0 : index
    %c0_3 = arith.constant 0 : index
    %c0_4 = arith.constant 0 : index
    %c0_5 = arith.constant 0 : index
    %2 = vector.load %arg1[%c0_2, %c0_3, %c0_4, %c0_5] : memref<1x4x16x16xf32, #tpu.memory_space<vmem>>, vector<1x4x1x16xf32>
    %3 = vector.shape_cast %2 : vector<1x4x1x16xf32> to vector<4x16xf32>
    %4 = arith.truncf %3 : vector<4x16xf32> to vector<4x16xbf16>
    %c0_6 = arith.constant 0 : index
    %c0_7 = arith.constant 0 : index
    %c19 = arith.constant 19 : index
    %5 = vector.load %arg5[%c0_6, %c0_7, %c19] : memref<1x16x422xbf16, #tpu.memory_space<vmem>>, vector<1x4x16xbf16>
    %6 = vector.shape_cast %5 : vector<1x4x16xbf16> to vector<4x16xbf16>
    %7 = vector.shape_cast %4 : vector<4x16xbf16> to vector<1x4x16xbf16>
    tpu.vector_store %arg5[%c0_6, %c0_7, %c19], %7 {strides = array<i32>} : memref<1x16x422xbf16, #tpu.memory_space<vmem>>, vector<1x4x16xbf16>,
    %c0_8 = arith.constant 0 : index
    %c0_9 = arith.constant 0 : index
    %c1 = arith.constant 1 : index
    %c0_10 = arith.constant 0 : index
    %8 = vector.load %arg1[%c0_8, %c0_9, %c1, %c0_10] : memref<1x4x16x16xf32, #tpu.memory_space<vmem>>, vector<1x4x1x16xf32>
    %9 = vector.shape_cast %8 : vector<1x4x1x16xf32> to vector<4x16xf32>
    %10 = arith.truncf %9 : vector<4x16xf32> to vector<4x16xbf16>
    %c0_11 = arith.constant 0 : index
    %c0_12 = arith.constant 0 : index
    %c37 = arith.constant 37 : index
    %11 = vector.load %arg5[%c0_11, %c0_12, %c37] : memref<1x16x422xbf16, #tpu.memory_space<vmem>>, vector<1x4x16xbf16>
    %12 = vector.shape_cast %11 : vector<1x4x16xbf16> to vector<4x16xbf16>
    %13 = vector.shape_cast %10 : vector<4x16xbf16> to vector<1x4x16xbf16>
    tpu.vector_store %arg5[%c0_11, %c0_12, %c37], %13 {strides = array<i32>} : memref<1x16x422xbf16, #tpu.memory_space<vmem>>, vector<1x4x16xbf16>,
    %c0_13 = arith.constant 0 : index
    %c0_14 = arith.constant 0 : index
    %c2 = arith.constant 2 : index
    %c0_15 = arith.constant 0 : index
    %14 = vector.load %arg1[%c0_13, %c0_14, %c2, %c0_15] : memref<1x4x16x16xf32, #tpu.memory_space<vmem>>, vector<1x4x1x16xf32>
    %15 = vector.shape_cast %14 : vector<1x4x1x16xf32> to vector<4x16xf32>
    %16 = arith.truncf %15 : vector<4x16xf32> to vector<4x16xbf16>
    %c0_16 = arith.constant 0 : index
    %c0_17 = arith.constant 0 : index
    %c55 = arith.constant 55 : index
    %17 = vector.load %arg5[%c0_16, %c0_17, %c55] : memref<1x16x422xbf16, #tpu.memory_space<vmem>>, vector<1x4x16xbf16>
    %18 = vector.shape_cast %17 : vector<1x4x16xbf16> to vector<4x16xbf16>
    %19 = vector.shape_cast %16 : vector<4x16xbf16> to vector<1x4x16xbf16>
    tpu.vector_store %arg5[%c0_16, %c0_17, %c55], %19 {strides = array<i32>} : memref<1x16x422xbf16, #tpu.memory_space<vmem>>, vector<1x4x16xbf16>,
    %c0_18 = arith.constant 0 : index
    %c0_19 = arith.constant 0 : index
    %c3 = arith.constant 3 : index
    %c0_20 = arith.constant 0 : index
    %20 = vector.load %arg1[%c0_18, %c0_19, %c3, %c0_20] : memref<1x4x16x16xf32, #tpu.memory_space<vmem>>, vector<1x4x1x16xf32>
    %21 = vector.shape_cast %20 : vector<1x4x1x16xf32> to vector<4x16xf32>
    %22 = arith.truncf %21 : vector<4x16xf32> to vector<4x16xbf16>
    %c0_21 = arith.constant 0 : index
    %c0_22 = arith.constant 0 : index
    %c73 = arith.constant 73 : index
    %23 = vector.load %arg5[%c0_21, %c0_22, %c73] : memref<1x16x422xbf16, #tpu.memory_space<vmem>>, vector<1x4x16xbf16>
    %24 = vector.shape_cast %23 : vector<1x4x16xbf16> to vector<4x16xbf16>
    %25 = vector.shape_cast %22 : vector<4x16xbf16> to vector<1x4x16xbf16>
    tpu.vector_store %arg5[%c0_21, %c0_22, %c73], %25 {strides = array<i32>} : memref<1x16x422xbf16, #tpu.memory_space<vmem>>, vector<1x4x16xbf16>,
    %c0_23 = arith.constant 0 : index
    %c0_24 = arith.constant 0 : index
    %c4 = arith.constant 4 : index
    %c0_25 = arith.constant 0 : index
    %26 = vector.load %arg1[%c0_23, %c0_24, %c4, %c0_25] : memref<1x4x16x16xf32, #tpu.memory_space<vmem>>, vector<1x4x1x16xf32>
    %27 = vector.shape_cast %26 : vector<1x4x1x16xf32> to vector<4x16xf32>
    %28 = arith.truncf %27 : vector<4x16xf32> to vector<4x16xbf16>
    %c0_26 = arith.constant 0 : index
    %c0_27 = arith.constant 0 : index
    %c91 = arith.constant 91 : index
    %29 = vector.load %arg5[%c0_26, %c0_27, %c91] : memref<1x16x422xbf16, #tpu.memory_space<vmem>>, vector<1x4x16xbf16>
    %30 = vector.shape_cast %29 : vector<1x4x16xbf16> to vector<4x16xbf16>
    %31 = vector.shape_cast %28 : vector<4x16xbf16> to vector<1x4x16xbf16>
    tpu.vector_store %arg5[%c0_26, %c0_27, %c91], %31 {strides = array<i32>} : memref<1x16x422xbf16, #tpu.memory_space<vmem>>, vector<1x4x16xbf16>,
    %c0_28 = arith.constant 0 : index
    %c0_29 = arith.constant 0 : index
    %c5 = arith.constant 5 : index
    %c0_30 = arith.constant 0 : index
    %32 = vector.load %arg1[%c0_28, %c0_29, %c5, %c0_30] : memref<1x4x16x16xf32, #tpu.memory_space<vmem>>, vector<1x4x1x16xf32>
    %33 = vector.shape_cast %32 : vector<1x4x1x16xf32> to vector<4x16xf32>
    %34 = arith.truncf %33 : vector<4x16xf32> to vector<4x16xbf16>
    %c0_31 = arith.constant 0 : index
    %c0_32 = arith.constant 0 : index
    %c109 = arith.constant 109 : index
    %35 = vector.load %arg5[%c0_31, %c0_32, %c109] : memref<1x16x422xbf16, #tpu.memory_space<vmem>>, vector<1x4x16xbf16>
    %36 = vector.shape_cast %35 : vector<1x4x16xbf16> to vector<4x16xbf16>
    %37 = vector.shape_cast %34 : vector<4x16xbf16> to vector<1x4x16xbf16>
    tpu.vector_store %arg5[%c0_31, %c0_32, %c109], %37 {strides = array<i32>} : memref<1x16x422xbf16, #tpu.memory_space<vmem>>, vector<1x4x16xbf16>,
    %c0_33 = arith.constant 0 : index
    %c0_34 = arith.constant 0 : index
    %c6 = arith.constant 6 : index
    %c0_35 = arith.constant 0 : index
    %38 = vector.load %arg1[%c0_33, %c0_34, %c6, %c0_35] : memref<1x4x16x16xf32, #tpu.memory_space<vmem>>, vector<1x4x1x16xf32>
    %39 = vector.shape_cast %38 : vector<1x4x1x16xf32> to vector<4x16xf32>
    %40 = arith.truncf %39 : vector<4x16xf32> to vector<4x16xbf16>
    %c0_36 = arith.constant 0 : index
    %c0_37 = arith.constant 0 : index
    %c127 = arith.constant 127 : index
    %41 = vector.load %arg5[%c0_36, %c0_37, %c127] : memref<1x16x422xbf16, #tpu.memory_space<vmem>>, vector<1x4x16xbf16>
    %42 = vector.shape_cast %41 : vector<1x4x16xbf16> to vector<4x16xbf16>
    %43 = vector.shape_cast %40 : vector<4x16xbf16> to vector<1x4x16xbf16>
    tpu.vector_store %arg5[%c0_36, %c0_37, %c127], %43 {strides = array<i32>} : memref<1x16x422xbf16, #tpu.memory_space<vmem>>, vector<1x4x16xbf16>,
    %c0_38 = arith.constant 0 : index
    %c0_39 = arith.constant 0 : index
    %c7 = arith.constant 7 : index
    %c0_40 = arith.constant 0 : index
    %44 = vector.load %arg1[%c0_38, %c0_39, %c7, %c0_40] : memref<1x4x16x16xf32, #tpu.memory_space<vmem>>, vector<1x4x1x16xf32>
    %45 = vector.shape_cast %44 : vector<1x4x1x16xf32> to vector<4x16xf32>
    %46 = arith.truncf %45 : vector<4x16xf32> to vector<4x16xbf16>
    %c0_41 = arith.constant 0 : index
    %c0_42 = arith.constant 0 : index
    %c145 = arith.constant 145 : index
    %47 = vector.load %arg5[%c0_41, %c0_42, %c145] : memref<1x16x422xbf16, #tpu.memory_space<vmem>>, vector<1x4x16xbf16>
    %48 = vector.shape_cast %47 : vector<1x4x16xbf16> to vector<4x16xbf16>
    %49 = vector.shape_cast %46 : vector<4x16xbf16> to vector<1x4x16xbf16>
    tpu.vector_store %arg5[%c0_41, %c0_42, %c145], %49 {strides = array<i32>} : memref<1x16x422xbf16, #tpu.memory_space<vmem>>, vector<1x4x16xbf16>,
    %c0_43 = arith.constant 0 : index
    %c0_44 = arith.constant 0 : index
    %c8 = arith.constant 8 : index
    %c0_45 = arith.constant 0 : index
    %50 = vector.load %arg1[%c0_43, %c0_44, %c8, %c0_45] : memref<1x4x16x16xf32, #tpu.memory_space<vmem>>, vector<1x4x1x16xf32>
    %51 = vector.shape_cast %50 : vector<1x4x1x16xf32> to vector<4x16xf32>
    %52 = arith.truncf %51 : vector<4x16xf32> to vector<4x16xbf16>
    %c0_46 = arith.constant 0 : index
    %c0_47 = arith.constant 0 : index
    %c163 = arith.constant 163 : index
    %53 = vector.load %arg5[%c0_46, %c0_47, %c163] : memref<1x16x422xbf16, #tpu.memory_space<vmem>>, vector<1x4x16xbf16>
    %54 = vector.shape_cast %53 : vector<1x4x16xbf16> to vector<4x16xbf16>
    %55 = vector.shape_cast %52 : vector<4x16xbf16> to vector<1x4x16xbf16>
    tpu.vector_store %arg5[%c0_46, %c0_47, %c163], %55 {strides = array<i32>} : memref<1x16x422xbf16, #tpu.memory_space<vmem>>, vector<1x4x16xbf16>,
    %c0_48 = arith.constant 0 : index
    %c0_49 = arith.constant 0 : index
    %c9 = arith.constant 9 : index
    %c0_50 = arith.constant 0 : index
    %56 = vector.load %arg1[%c0_48, %c0_49, %c9, %c0_50] : memref<1x4x16x16xf32, #tpu.memory_space<vmem>>, vector<1x4x1x16xf32>
    %57 = vector.shape_cast %56 : vector<1x4x1x16xf32> to vector<4x16xf32>
    %58 = arith.truncf %57 : vector<4x16xf32> to vector<4x16xbf16>
    %c0_51 = arith.constant 0 : index
    %c0_52 = arith.constant 0 : index
    %c181 = arith.constant 181 : index
    %59 = vector.load %arg5[%c0_51, %c0_52, %c181] : memref<1x16x422xbf16, #tpu.memory_space<vmem>>, vector<1x4x16xbf16>
    %60 = vector.shape_cast %59 : vector<1x4x16xbf16> to vector<4x16xbf16>
    %61 = vector.shape_cast %58 : vector<4x16xbf16> to vector<1x4x16xbf16>
    tpu.vector_store %arg5[%c0_51, %c0_52, %c181], %61 {strides = array<i32>} : memref<1x16x422xbf16, #tpu.memory_space<vmem>>, vector<1x4x16xbf16>,
    %c0_53 = arith.constant 0 : index
    %c0_54 = arith.constant 0 : index
    %c10 = arith.constant 10 : index
    %c0_55 = arith.constant 0 : index
    %62 = vector.load %arg1[%c0_53, %c0_54, %c10, %c0_55] : memref<1x4x16x16xf32, #tpu.memory_space<vmem>>, vector<1x4x1x16xf32>
    %63 = vector.shape_cast %62 : vector<1x4x1x16xf32> to vector<4x16xf32>
    %64 = arith.truncf %63 : vector<4x16xf32> to vector<4x16xbf16>
    %c0_56 = arith.constant 0 : index
    %c0_57 = arith.constant 0 : index
    %c199 = arith.constant 199 : index
    %65 = vector.load %arg5[%c0_56, %c0_57, %c199] : memref<1x16x422xbf16, #tpu.memory_space<vmem>>, vector<1x4x16xbf16>
    %66 = vector.shape_cast %65 : vector<1x4x16xbf16> to vector<4x16xbf16>
    %67 = vector.shape_cast %64 : vector<4x16xbf16> to vector<1x4x16xbf16>
    tpu.vector_store %arg5[%c0_56, %c0_57, %c199], %67 {strides = array<i32>} : memref<1x16x422xbf16, #tpu.memory_space<vmem>>, vector<1x4x16xbf16>,
    %c0_58 = arith.constant 0 : index
    %c0_59 = arith.constant 0 : index
    %c11 = arith.constant 11 : index
    %c0_60 = arith.constant 0 : index
    %68 = vector.load %arg1[%c0_58, %c0_59, %c11, %c0_60] : memref<1x4x16x16xf32, #tpu.memory_space<vmem>>, vector<1x4x1x16xf32>
    %69 = vector.shape_cast %68 : vector<1x4x1x16xf32> to vector<4x16xf32>
    %70 = arith.truncf %69 : vector<4x16xf32> to vector<4x16xbf16>
    %c0_61 = arith.constant 0 : index
    %c0_62 = arith.constant 0 : index
    %c217 = arith.constant 217 : index
    %71 = vector.load %arg5[%c0_61, %c0_62, %c217] : memref<1x16x422xbf16, #tpu.memory_space<vmem>>, vector<1x4x16xbf16>
    %72 = vector.shape_cast %71 : vector<1x4x16xbf16> to vector<4x16xbf16>
    %73 = vector.shape_cast %70 : vector<4x16xbf16> to vector<1x4x16xbf16>
    tpu.vector_store %arg5[%c0_61, %c0_62, %c217], %73 {strides = array<i32>} : memref<1x16x422xbf16, #tpu.memory_space<vmem>>, vector<1x4x16xbf16>,
    %c0_63 = arith.constant 0 : index
    %c0_64 = arith.constant 0 : index
    %c12 = arith.constant 12 : index
    %c0_65 = arith.constant 0 : index
    %74 = vector.load %arg1[%c0_63, %c0_64, %c12, %c0_65] : memref<1x4x16x16xf32, #tpu.memory_space<vmem>>, vector<1x4x1x16xf32>
    %75 = vector.shape_cast %74 : vector<1x4x1x16xf32> to vector<4x16xf32>
    %76 = arith.truncf %75 : vector<4x16xf32> to vector<4x16xbf16>
    %c0_66 = arith.constant 0 : index
    %c0_67 = arith.constant 0 : index
    %c235 = arith.constant 235 : index
    %77 = vector.load %arg5[%c0_66, %c0_67, %c235] : memref<1x16x422xbf16, #tpu.memory_space<vmem>>, vector<1x4x16xbf16>
    %78 = vector.shape_cast %77 : vector<1x4x16xbf16> to vector<4x16xbf16>
    %79 = vector.shape_cast %76 : vector<4x16xbf16> to vector<1x4x16xbf16>
    tpu.vector_store %arg5[%c0_66, %c0_67, %c235], %79 {strides = array<i32>} : memref<1x16x422xbf16, #tpu.memory_space<vmem>>, vector<1x4x16xbf16>,
    %c0_68 = arith.constant 0 : index
    %c0_69 = arith.constant 0 : index
    %c13 = arith.constant 13 : index
    %c0_70 = arith.constant 0 : index
    %80 = vector.load %arg1[%c0_68, %c0_69, %c13, %c0_70] : memref<1x4x16x16xf32, #tpu.memory_space<vmem>>, vector<1x4x1x16xf32>
    %81 = vector.shape_cast %80 : vector<1x4x1x16xf32> to vector<4x16xf32>
    %82 = arith.truncf %81 : vector<4x16xf32> to vector<4x16xbf16>
    %c0_71 = arith.constant 0 : index
    %c0_72 = arith.constant 0 : index
    %c253 = arith.constant 253 : index
    %83 = vector.load %arg5[%c0_71, %c0_72, %c253] : memref<1x16x422xbf16, #tpu.memory_space<vmem>>, vector<1x4x16xbf16>
    %84 = vector.shape_cast %83 : vector<1x4x16xbf16> to vector<4x16xbf16>
    %85 = vector.shape_cast %82 : vector<4x16xbf16> to vector<1x4x16xbf16>
    tpu.vector_store %arg5[%c0_71, %c0_72, %c253], %85 {strides = array<i32>} : memref<1x16x422xbf16, #tpu.memory_space<vmem>>, vector<1x4x16xbf16>,
    %c0_73 = arith.constant 0 : index
    %c0_74 = arith.constant 0 : index
    %c14 = arith.constant 14 : index
    %c0_75 = arith.constant 0 : index
    %86 = vector.load %arg1[%c0_73, %c0_74, %c14, %c0_75] : memref<1x4x16x16xf32, #tpu.memory_space<vmem>>, vector<1x4x1x16xf32>
    %87 = vector.shape_cast %86 : vector<1x4x1x16xf32> to vector<4x16xf32>
    %88 = arith.truncf %87 : vector<4x16xf32> to vector<4x16xbf16>
    %c0_76 = arith.constant 0 : index
    %c0_77 = arith.constant 0 : index
    %c271 = arith.constant 271 : index
    %89 = vector.load %arg5[%c0_76, %c0_77, %c271] : memref<1x16x422xbf16, #tpu.memory_space<vmem>>, vector<1x4x16xbf16>
    %90 = vector.shape_cast %89 : vector<1x4x16xbf16> to vector<4x16xbf16>
    %91 = vector.shape_cast %88 : vector<4x16xbf16> to vector<1x4x16xbf16>
    tpu.vector_store %arg5[%c0_76, %c0_77, %c271], %91 {strides = array<i32>} : memref<1x16x422xbf16, #tpu.memory_space<vmem>>, vector<1x4x16xbf16>,
    %c0_78 = arith.constant 0 : index
    %c0_79 = arith.constant 0 : index
    %c15 = arith.constant 15 : index
    %c0_80 = arith.constant 0 : index
    %92 = vector.load %arg1[%c0_78, %c0_79, %c15, %c0_80] : memref<1x4x16x16xf32, #tpu.memory_space<vmem>>, vector<1x4x1x16xf32>
    %93 = vector.shape_cast %92 : vector<1x4x1x16xf32> to vector<4x16xf32>
    %94 = arith.truncf %93 : vector<4x16xf32> to vector<4x16xbf16>
    %c0_81 = arith.constant 0 : index
    %c0_82 = arith.constant 0 : index
    %c289 = arith.constant 289 : index
    %95 = vector.load %arg5[%c0_81, %c0_82, %c289] : memref<1x16x422xbf16, #tpu.memory_space<vmem>>, vector<1x4x16xbf16>
    %96 = vector.shape_cast %95 : vector<1x4x16xbf16> to vector<4x16xbf16>
    %97 = vector.shape_cast %94 : vector<4x16xbf16> to vector<1x4x16xbf16>
    tpu.vector_store %arg5[%c0_81, %c0_82, %c289], %97 {strides = array<i32>} : memref<1x16x422xbf16, #tpu.memory_space<vmem>>, vector<1x4x16xbf16>,
    %c0_83 = arith.constant 0 : index
    %c0_84 = arith.constant 0 : index
    %98 = vector.load %arg2[%c0_83, %c0_84] : memref<8x144xbf16, #tpu.memory_space<vmem>>, vector<8x144xbf16>
    %c0_85 = arith.constant 0 : index
    %c0_86 = arith.constant 0 : index
    %99 = vector.load %arg3[%c0_85, %c0_86] : memref<8x1xf32, #tpu.memory_space<vmem>>, vector<8x1xf32>
    %c0_87 = arith.constant 0 : index
    %c0_88 = arith.constant 0 : index
    %c0_89 = arith.constant 0 : index
    %100 = vector.load %arg5[%c0_87, %c0_88, %c0_89] : memref<1x16x422xbf16, #tpu.memory_space<vmem>>, vector<1x16x384xbf16>
    %101 = vector.shape_cast %100 : vector<1x16x384xbf16> to vector<16x384xbf16>
    %c0_90 = arith.constant 0 : index
    %c0_91 = arith.constant 0 : index
    %c1_92 = arith.constant 1 : index
    %102 = vector.load %arg5[%c0_90, %c0_91, %c1_92] : memref<1x16x422xbf16, #tpu.memory_space<vmem>>, vector<1x16x384xbf16>
    %103 = vector.shape_cast %102 : vector<1x16x384xbf16> to vector<16x384xbf16>
    %c0_93 = arith.constant 0 : index
    %c0_94 = arith.constant 0 : index
    %c2_95 = arith.constant 2 : index
    %104 = vector.load %arg5[%c0_93, %c0_94, %c2_95] : memref<1x16x422xbf16, #tpu.memory_space<vmem>>, vector<1x16x384xbf16>
    %105 = vector.shape_cast %104 : vector<1x16x384xbf16> to vector<16x384xbf16>
    %c0_96 = arith.constant 0 : index
    %c0_97 = arith.constant 0 : index
    %c18 = arith.constant 18 : index
    %106 = vector.load %arg5[%c0_96, %c0_97, %c18] : memref<1x16x422xbf16, #tpu.memory_space<vmem>>, vector<1x16x384xbf16>
    %107 = vector.shape_cast %106 : vector<1x16x384xbf16> to vector<16x384xbf16>
    %c0_98 = arith.constant 0 : index
    %c0_99 = arith.constant 0 : index
    %c19_100 = arith.constant 19 : index
    %108 = vector.load %arg5[%c0_98, %c0_99, %c19_100] : memref<1x16x422xbf16, #tpu.memory_space<vmem>>, vector<1x16x384xbf16>
    %109 = vector.shape_cast %108 : vector<1x16x384xbf16> to vector<16x384xbf16>
    %c0_101 = arith.constant 0 : index
    %c0_102 = arith.constant 0 : index
    %c20 = arith.constant 20 : index
    %110 = vector.load %arg5[%c0_101, %c0_102, %c20] : memref<1x16x422xbf16, #tpu.memory_space<vmem>>, vector<1x16x384xbf16>
    %111 = vector.shape_cast %110 : vector<1x16x384xbf16> to vector<16x384xbf16>
    %c0_103 = arith.constant 0 : index
    %c0_104 = arith.constant 0 : index
    %c36 = arith.constant 36 : index
    %112 = vector.load %arg5[%c0_103, %c0_104, %c36] : memref<1x16x422xbf16, #tpu.memory_space<vmem>>, vector<1x16x384xbf16>
    %113 = vector.shape_cast %112 : vector<1x16x384xbf16> to vector<16x384xbf16>
    %c0_105 = arith.constant 0 : index
    %c0_106 = arith.constant 0 : index
    %c37_107 = arith.constant 37 : index
    %114 = vector.load %arg5[%c0_105, %c0_106, %c37_107] : memref<1x16x422xbf16, #tpu.memory_space<vmem>>, vector<1x16x384xbf16>
    %115 = vector.shape_cast %114 : vector<1x16x384xbf16> to vector<16x384xbf16>
    %c0_108 = arith.constant 0 : index
    %c0_109 = arith.constant 0 : index
    %c38 = arith.constant 38 : index
    %116 = vector.load %arg5[%c0_108, %c0_109, %c38] : memref<1x16x422xbf16, #tpu.memory_space<vmem>>, vector<1x16x384xbf16>
    %117 = vector.shape_cast %116 : vector<1x16x384xbf16> to vector<16x384xbf16>
    %118 = tpu.concatenate %101, %103, %105, %107, %109, %111, %113, %115, %117 in 0 : vector<16x384xbf16>, vector<16x384xbf16>, vector<16x384xbf16>, vector<16x384xbf16>, vector<16x384xbf16>, vector<16x384xbf16>, vector<16x384xbf16>, vector<16x384xbf16>, vector<16x384xbf16> -> vector<144x384xbf16>
    %cst_110 = arith.constant dense<0.000000e+00> : vector<8x384xf32>
    %119 = tpu.matmul %98, %118, %cst_110 {dimension_numbers = #tpu.dot_dimension_numbers<[1], [0], [0], [1], [0, 0, 1, 1], [], []>} : vector<8x144xbf16>, vector<144x384xbf16>, vector<8x384xf32> -> vector<8x384xf32>
    %120 = vector.broadcast %99 : vector<8x1xf32> to vector<8x384xf32>
    %121 = arith.addf %119, %120 : vector<8x384xf32>
    %cst_111 = arith.constant 0.000000e+00 : f32
    %122 = vector.broadcast %cst_111 : f32 to vector<8x384xf32>
    %123 = arith.maximumf %121, %122 : vector<8x384xf32>
    %124 = arith.truncf %123 : vector<8x384xf32> to vector<8x384xbf16>
    %c0_112 = arith.constant 0 : index
    %c0_113 = arith.constant 0 : index
    %c0_114 = arith.constant 0 : index
    %125 = vector.load %arg4[%c0_112, %c0_113, %c0_114] : memref<1x8x384xbf16, #tpu.memory_space<vmem>>, vector<1x8x384xbf16>
    %126 = vector.shape_cast %125 : vector<1x8x384xbf16> to vector<8x384xbf16>
    %127 = vector.shape_cast %124 : vector<8x384xbf16> to vector<1x8x384xbf16>
    tpu.vector_store %arg4[%c0_112, %c0_113, %c0_114], %127 {strides = array<i32>} : memref<1x8x384xbf16, #tpu.memory_space<vmem>>, vector<1x8x384xbf16>,
    return
  }
  func.func @transform_0(%arg0: i32) -> (i32, i32, i32, i32) {
    %c0_i32 = arith.constant 0 : i32
    %c0_i32_0 = arith.constant 0 : i32
    %c0_i32_1 = arith.constant 0 : i32
    %c0_i32_2 = arith.constant 0 : i32
    return %arg0, %c0_i32, %c0_i32_0, %c0_i32_1 : i32, i32, i32, i32
  }
  func.func @transform_1(%arg0: i32) -> (i32, i32) {
    %c0_i32 = arith.constant 0 : i32
    %c0_i32_0 = arith.constant 0 : i32
    %c0_i32_1 = arith.constant 0 : i32
    return %c0_i32, %c0_i32_0 : i32, i32
  }
  func.func @transform_2(%arg0: i32) -> (i32, i32) {
    %c0_i32 = arith.constant 0 : i32
    %c0_i32_0 = arith.constant 0 : i32
    %c0_i32_1 = arith.constant 0 : i32
    return %c0_i32, %c0_i32_0 : i32, i32
  }
  func.func @transform_3(%arg0: i32) -> (i32, i32, i32) {
    %c0_i32 = arith.constant 0 : i32
    %c0_i32_0 = arith.constant 0 : i32
    %c0_i32_1 = arith.constant 0 : i32
    return %arg0, %c0_i32, %c0_i32_0 : i32, i32, i32
  }
}

</mosaic_0001>

<bundles_post_ra>
// kernel: conv_bn_relu.1
= control target key start
LH: loop header
LB: loop body
LE: loop exit
PB: predicated region body
PF: predicated region fallthrough
CT: control target
= control target key end

     0   :  { %s1034_s12 = smov 0   ;;  %s1260_s0 = inlined_call_operand.vmem [shape: f32[2,4,16,16], index: 0, kind: input, shape index: {}]   ;;  %s1261_s1 = inlined_call_operand.vmem [shape: bf16[8,144], index: 1, kind: input, shape index: {}]   ;;  %s1262_s2 = inlined_call_operand.vmem [shape: f32[8,1], index: 2, kind: input, shape index: {}]   ;;  %s1263_s3 = inlined_call_operand.vmem [shape: bf16[2,8,384], index: 3, kind: output, shape index: {}]  }
   0x1 LB: > { %s931_s13 = sadd.s32 4294967295, %s990_s12   ;;  %p935_p0 = scmp.ge.s32.totalorder %s990_s12, 1  ;;  %s990_s12 = sphi %s1034_s12, %s13_s12  }
   0x2   : > { %p137_p1 = scmp.lt.s32.totalorder %s990_s12, 3 }
   0x4   : > { %p138_p2 = pnand %p935_p0, %p137_p1 }
   0x5   : > { %p161_p3 = scmp.lt.s32.totalorder (!%p138_p2), %s931_s13, 1  ;;  %v992_v0 = vmov (!%p138_p2), 0   ;;  %vm194_vm0 = vcmask (!%p138_p2), 1041409   ;;  %vm197_vm1 = vcmask (!%p138_p2), 1042434   ;;  %vm200_vm2 = vcmask (!%p138_p2), 1043459   ;;  %s993_s18 = smov (!%p138_p2), 127  }
   0x6   : > { %141 = sbr.rel (%p138_p2) target bundleno = 602 (0x25a), region = 32  ;;  %173 = vst [vmem:[#allocation2 + $0x8] sm:$0xff] (!%p138_p2), %v992_v0  ;;  %172 = vst [vmem:[#allocation2] sm:$0xff] (!%p138_p2), %v992_v0  ;;  %818 = vmatprep.subr.bf16.mxu1 (!%p138_p2), %v992_v0  ;;  %981 = vset.pattern.permute.xlu0 (!%p138_p2), %v992_v0  ;;  %s994_s19 = smov (!%p138_p2), 19   ;;  %vm175_vm3 = vcmask (!%p138_p2), 310272   ;;  %vm376_vm4 = vcmask (!%p138_p2), 115712  }
   0x7   : > { %174 = vst [vmem:[#allocation2 + $0x10] sm:$0xff] (!%p138_p2), %v992_v0  ;;  %s995_s20 = smov (!%p138_p2), 17   ;;  %s996_s21 = smov (!%p138_p2), 35   ;;  %176 = vst.msk [vmem:[#allocation2 + $0x18] sm:$0xff] (!%p138_p2), %vm175_vm3, %v992_v0  ;;  %vm206_vm5 = vcmask (!%p138_p2), 279704   ;;  %vm404_vm6 = vcmask (!%p138_p2), 263304  }
   0x8   : > { %s997_s22 = smov (!%p138_p2), 37   ;;  %s998_s23 = smov (!%p138_p2), 53   ;;  %vm432_vm7 = vcmask (!%p138_p2), 410904   ;;  %vm234_vm8 = vcmask (!%p138_p2), 427304   ;;  %vm460_vm9 = vcmask (!%p138_p2), 558504   ;;  %vm262_vm10 = vcmask (!%p138_p2), 574904  }
   0x9   : > { %s999_s24 = smov (!%p138_p2), 55   ;;  %s1000_s25 = smov (!%p138_p2), 71   ;;  %vm488_vm11 = vcmask (!%p138_p2), 706104   ;;  %vm290_vm12 = vcmask (!%p138_p2), 722504   ;;  %vm516_vm13 = vcmask (!%p138_p2), 853704   ;;  %vm574_vm14 = vcmask (!%p138_p2), 99328  }
   0xa   : > { %s1001_s26 = smov (!%p138_p2), 73   ;;  %s1002_s27 = smov (!%p138_p2), 89   ;;  %vm318_vm15 = vcmask (!%p138_p2), 870104   ;;  %vm346_vm3 = vcmask (!%p138_p2), 1017704  }
   0xb   : > { %s1003_s28 = smov (!%p138_p2), 125   ;;  %s1004_s29 = smov (!%p138_p2), 91  }
   0xc   : > { %s1005_s30 = smov (!%p138_p2), 107   ;;  %s1006_s4 = smov (!%p138_p2), 15  }
   0xd   : > { %s1265_s13 = smov (!%p161_p3, %s931_s13), 1  ;;  %s1007_s5 = smov 109  }
   0xe   : > { %s947_s14 = sshll.u32 %s1265_s13, 6  ;;  %s1008_s6 = smov 33  }
   0xf   : > { %s1053_s17 = scalar_lea.vmem %s1260_s0, %s947_s14  ;;  %s1009_s7 = smov 126  }
  0x10   : > { %v348_v1 = vld [vmem:[%s1053_s17 + $0x6] sm:$0x1]  ;;  %v349_v2 = vld [vmem:[%s1053_s17 + $0x16] sm:$0x1]  ;;  %v177_v8 = vld [vmem:[%s1053_s17] sm:$0x1] }
  0x11   : > { %v350_v3 = vld [vmem:[%s1053_s17 + $0x26] sm:$0x1]  ;;  %v351_v4 = vld [vmem:[%s1053_s17 + $0x36] sm:$0x1]  ;;  %v352_v5 = vpack.c.bf16 %v348_v1, %v348_v1  ;;  %v353_v6 = vpack.c.bf16 %v349_v2, %v349_v2  ;;  %v178_v9 = vld [vmem:[%s1053_s17 + $0x10] sm:$0x1]  ;;  %v181_v13 = vpack.c.bf16 %v177_v8, %v177_v8 }
  0x12   : > { %v354_v7 = vpack.c.bf16 %v350_v3, %v350_v3  ;;  %v355_v10 = vpack.c.bf16 %v351_v4, %v351_v4  ;;  %v179_v11 = vld [vmem:[%s1053_s17 + $0x20] sm:$0x1]  ;;  %v180_v12 = vld [vmem:[%s1053_s17 + $0x30] sm:$0x1]  ;;  %v182_v14 = vpack.c.bf16 %v178_v9, %v178_v9  ;;  %v378_v15 = vld [vmem:[%s1053_s17 + $0x7] sm:$0x1] }
  0x13   : > { %v360_v16 = vunpack.c.l.b16 %v352_v5  ;;  %v361_v17 = vunpack.c.l.b16 %v353_v6  ;;  %v183_v19 = vpack.c.bf16 %v179_v11, %v179_v11  ;;  %v379_v20 = vld [vmem:[%s1053_s17 + $0x17] sm:$0x1]  ;;  %v184_v22 = vpack.c.bf16 %v180_v12, %v180_v12  ;;  %v380_v25 = vld [vmem:[%s1053_s17 + $0x27] sm:$0x1]  ;;  %v406_v39 = vld [vmem:[%s1053_s17 + $0x8] sm:$0x1] }
  0x14   : > { %v362_v18 = vunpack.c.l.b16 %v354_v7  ;;  %v363_v21 = vunpack.c.l.b16 %v355_v10  ;;  %v189_v23 = vunpack.c.l.b16 %v181_v13  ;;  %v190_v24 = vunpack.c.l.b16 %v182_v14  ;;  %v381_v26 = vld [vmem:[%s1053_s17 + $0x37] sm:$0x1]  ;;  %v407_v44 = vld [vmem:[%s1053_s17 + $0x18] sm:$0x1]  ;;  %v408_v49 = vld [vmem:[%s1053_s17 + $0x28] sm:$0x1] }
  0x15   : > { %v364_v27 = vrot.slane %v361_v17, 7  ;;  %v191_v29 = vunpack.c.l.b16 %v183_v19  ;;  %v382_v30 = vpack.c.bf16 %v378_v15, %v378_v15  ;;  %v192_v32 = vunpack.c.l.b16 %v184_v22  ;;  %v409_v50 = vld [vmem:[%s1053_s17 + $0x38] sm:$0x1]  ;;  %v208_v55 = vld [vmem:[%s1053_s17 + $0x1] sm:$0x1]  ;;  %s1010_s8 = smov 110  }
  0x16   : > { %v366_v28 = vrot.slane %v362_v18, 6  ;;  %v368_v31 = vrot.slane %v363_v21, 5  ;;  %v193_v33 = vrot.slane %v190_v24, 7  ;;  %v383_v34 = vpack.c.bf16 %v379_v20, %v379_v20  ;;  %v209_v56 = vld [vmem:[%s1053_s17 + $0x11] sm:$0x1]  ;;  %s1011_s9 = smov 108  }
  0x17   : > { %v365_v35 = vsel %vm194_vm0, %v364_v27, %v360_v16  ;;  %v196_v36 = vrot.slane %v191_v29, 6  ;;  %v384_v37 = vpack.c.bf16 %v380_v25, %v380_v25  ;;  %v385_v38 = vpack.c.bf16 %v381_v26, %v381_v26  ;;  %v210_v61 = vld [vmem:[%s1053_s17 + $0x21] sm:$0x1]  ;;  %v211_v3 = vld [vmem:[%s1053_s17 + $0x31] sm:$0x1]  ;;  %s1012_s10 = smov 92  }
  0x18   : > { %v367_v40 = vsel %vm197_vm1, %v366_v28, %v365_v35  ;;  %v195_v41 = vsel %vm194_vm0, %v193_v33, %v189_v23  ;;  %v199_v42 = vrot.slane %v192_v32, 5  ;;  %v390_v43 = vunpack.c.l.b16 %v382_v30  ;;  %v434_v12 = vld [vmem:[%s1053_s17 + $0x9] sm:$0x1]  ;;  %v435_v17 = vld [vmem:[%s1053_s17 + $0x19] sm:$0x1]  ;;  %s1013_s11 = smov 90  }
  0x19   : > { %v369_v45 = vsel %vm200_vm2, %v368_v31, %v367_v40  ;;  %v198_v46 = vsel %vm197_vm1, %v196_v36, %v195_v41  ;;  %v391_v47 = vunpack.c.l.b16 %v383_v34  ;;  %v392_v48 = vunpack.c.l.b16 %v384_v37  ;;  %v436_v18 = vld [vmem:[%s1053_s17 + $0x29] sm:$0x1]  ;;  %v437_v23 = vld [vmem:[%s1053_s17 + $0x39] sm:$0x1]  ;;  %v236_v32 = vld [vmem:[%s1053_s17 + $0x2] sm:$0x1] }
  0x1a   : > { %v370_v51 = vpack.c.b16 %v369_v45, %v369_v45  ;;  %v201_v52 = vsel %vm200_vm2, %v199_v42, %v198_v46  ;;  %v393_v53 = vunpack.c.l.b16 %v385_v38  ;;  %v410_v54 = vpack.c.bf16 %v406_v39, %v406_v39  ;;  %v237_v37 = vld [vmem:[%s1053_s17 + $0x12] sm:$0x1]  ;;  %v238_v38 = vld [vmem:[%s1053_s17 + $0x22] sm:$0x1] }
  0x1b   : > { %v202_v57 = vpack.c.b16 %v201_v52, %v201_v52  ;;  %v394_v58 = vrot.slane %v391_v47, 7  ;;  %v396_v59 = vrot.slane %v392_v48, 6  ;;  %v411_v60 = vpack.c.bf16 %v407_v44, %v407_v44  ;;  %v462_v52 = vld [vmem:[%s1053_s17 + $0xa] sm:$0x1] }
  0x1c   : > { %371 = vrot.lane.b32.xlu0 %v370_v51, %s993_s18  ;;  %v398_v62 = vrot.slane %v393_v53, 5  ;;  %v412_v63 = vpack.c.bf16 %v408_v49, %v408_v49  ;;  %v413_v1 = vpack.c.bf16 %v409_v50, %v409_v50  ;;  %v418_v2 = vunpack.c.l.b16 %v410_v54  ;;  %v463_v53 = vld [vmem:[%s1053_s17 + $0x1a] sm:$0x1] }
  0x1d   : > { %203 = vrot.lane.b32.xlu1 %v202_v57, %s994_s19  ;;  %v395_v4 = vsel %vm194_vm0, %v394_v58, %v390_v43  ;;  %v419_v5 = vunpack.c.l.b16 %v411_v60  ;;  %v212_v6 = vpack.c.bf16 %v208_v55, %v208_v55  ;;  %v213_v7 = vpack.c.bf16 %v209_v56, %v209_v56  ;;  %v239_v43 = vld [vmem:[%s1053_s17 + $0x32] sm:$0x1]  ;;  %v464_v58 = vld [vmem:[%s1053_s17 + $0x2a] sm:$0x1] }
  0x1e   : > { %v397_v8 = vsel %vm197_vm1, %v396_v59, %v395_v4  ;;  %v420_v9 = vunpack.c.l.b16 %v412_v63  ;;  %v421_v10 = vunpack.c.l.b16 %v413_v1  ;;  %v214_v11 = vpack.c.bf16 %v210_v61, %v210_v61  ;;  %v465_v63 = vld [vmem:[%s1053_s17 + $0x3a] sm:$0x1] }
  0x1f   : > { %v399_v13 = vsel %vm200_vm2, %v398_v62, %v397_v8  ;;  %v422_v14 = vrot.slane %v419_v5, 7  ;;  %v215_v15 = vpack.c.bf16 %v211_v3, %v211_v3  ;;  %v220_v16 = vunpack.c.l.b16 %v212_v6  ;;  %v264_v5 = vld [vmem:[%s1053_s17 + $0x3] sm:$0x1] }
  0x20   : > { %v400_v19 = vpack.c.b16 %v399_v13, %v399_v13  ;;  %v424_v20 = vrot.slane %v420_v9, 6  ;;  %v426_v21 = vrot.slane %v421_v10, 5  ;;  %v221_v22 = vunpack.c.l.b16 %v213_v7  ;;  %v265_v10 = vld [vmem:[%s1053_s17 + $0x13] sm:$0x1] }
  0x21   : > { %v423_v24 = vsel %vm194_vm0, %v422_v14, %v418_v2  ;;  %v222_v25 = vunpack.c.l.b16 %v214_v11  ;;  %v223_v26 = vunpack.c.l.b16 %v215_v15  ;;  %v438_v27 = vpack.c.bf16 %v434_v12, %v434_v12  ;;  %v266_v11 = vld [vmem:[%s1053_s17 + $0x23] sm:$0x1] }
  0x22   : > { %401 = vrot.lane.b32.xlu0 %v400_v19, %s995_s20  ;;  %v425_v28 = vsel %vm197_vm1, %v424_v20, %v423_v24  ;;  %v224_v29 = vrot.slane %v221_v22, 7  ;;  %v439_v30 = vpack.c.bf16 %v435_v17, %v435_v17  ;;  %v440_v31 = vpack.c.bf16 %v436_v18, %v436_v18 }
  0x23   : > { %v427_v33 = vsel %vm200_vm2, %v426_v21, %v425_v28  ;;  %v226_v34 = vrot.slane %v222_v25, 6  ;;  %v228_v35 = vrot.slane %v223_v26, 5  ;;  %v441_v36 = vpack.c.bf16 %v437_v23, %v437_v23  ;;  %v490_v25 = vld [vmem:[%s1053_s17 + $0xb] sm:$0x1] }
  0x24   : > { %v428_v39 = vpack.c.b16 %v427_v33, %v427_v33  ;;  %v225_v40 = vsel %vm194_vm0, %v224_v29, %v220_v16  ;;  %v446_v41 = vunpack.c.l.b16 %v438_v27  ;;  %v447_v42 = vunpack.c.l.b16 %v439_v30  ;;  %v267_v16 = vld [vmem:[%s1053_s17 + $0x33] sm:$0x1]  ;;  %v491_v30 = vld [vmem:[%s1053_s17 + $0x1b] sm:$0x1] }
  0x25   : > { %v227_v44 = vsel %vm197_vm1, %v226_v34, %v225_v40  ;;  %v448_v45 = vunpack.c.l.b16 %v440_v31  ;;  %v449_v46 = vunpack.c.l.b16 %v441_v36  ;;  %v240_v47 = vpack.c.bf16 %v236_v32, %v236_v32  ;;  %v492_v31 = vld [vmem:[%s1053_s17 + $0x2b] sm:$0x1]  ;;  %v493_v36 = vld [vmem:[%s1053_s17 + $0x3b] sm:$0x1] }
  0x26   : > { %429 = vrot.lane.b32.xlu1 %v428_v39, %s996_s21  ;;  %v229_v48 = vsel %vm200_vm2, %v228_v35, %v227_v44  ;;  %v450_v49 = vrot.slane %v447_v42, 7  ;;  %v241_v50 = vpack.c.bf16 %v237_v37, %v237_v37  ;;  %v242_v51 = vpack.c.bf16 %v238_v38, %v238_v38 }
  0x27   : > { %v230_v54 = vpack.c.b16 %v229_v48, %v229_v48  ;;  %v452_v55 = vrot.slane %v448_v45, 6  ;;  %v454_v56 = vrot.slane %v449_v46, 5  ;;  %v243_v57 = vpack.c.bf16 %v239_v43, %v239_v43  ;;  %v546_v45 = vld [vmem:[%s1053_s17 + $0xd] sm:$0x1] }
  0x28   : > { %v451_v59 = vsel %vm194_vm0, %v450_v49, %v446_v41  ;;  %v248_v60 = vunpack.c.l.b16 %v240_v47  ;;  %v249_v61 = vunpack.c.l.b16 %v241_v50  ;;  %v250_v62 = vunpack.c.l.b16 %v242_v51  ;;  %v547_v50 = vld [vmem:[%s1053_s17 + $0x1d] sm:$0x1]  ;;  %v548_v51 = vld [vmem:[%s1053_s17 + $0x2d] sm:$0x1] }
  0x29   : > { %231 = vrot.lane.b32.xlu0 %v230_v54, %s997_s22  ;;  %v453_v1 = vsel %vm197_vm1, %v452_v55, %v451_v59  ;;  %v251_v2 = vunpack.c.l.b16 %v243_v57  ;;  %v466_v3 = vpack.c.bf16 %v462_v52, %v462_v52  ;;  %v467_v4 = vpack.c.bf16 %v463_v53, %v463_v53 }
  0x2a   : > { %v455_v6 = vsel %vm200_vm2, %v454_v56, %v453_v1  ;;  %v252_v7 = vrot.slane %v249_v61, 7  ;;  %v254_v8 = vrot.slane %v250_v62, 6  ;;  %v468_v9 = vpack.c.bf16 %v464_v58, %v464_v58  ;;  %v549_v56 = vld [vmem:[%s1053_s17 + $0x3d] sm:$0x1] }
  0x2b   : > { %v456_v12 = vpack.c.b16 %v455_v6, %v455_v6  ;;  %v256_v13 = vrot.slane %v251_v2, 5  ;;  %v469_v14 = vpack.c.bf16 %v465_v63, %v465_v63  ;;  %v474_v15 = vunpack.c.l.b16 %v466_v3  ;;  %v292_v2 = vld [vmem:[%s1053_s17 + $0x4] sm:$0x1]  ;;  %v293_v3 = vld [vmem:[%s1053_s17 + $0x14] sm:$0x1] }
  0x2c   : > { %v253_v17 = vsel %vm194_vm0, %v252_v7, %v248_v60  ;;  %v475_v18 = vunpack.c.l.b16 %v467_v4  ;;  %v476_v19 = vunpack.c.l.b16 %v468_v9  ;;  %v268_v20 = vpack.c.bf16 %v264_v5, %v264_v5 }
  0x2d   : > { %457 = vrot.lane.b32.xlu1 %v456_v12, %s998_s23  ;;  %v255_v21 = vsel %vm197_vm1, %v254_v8, %v253_v17  ;;  %v477_v22 = vunpack.c.l.b16 %v469_v14  ;;  %v269_v23 = vpack.c.bf16 %v265_v10, %v265_v10  ;;  %v270_v24 = vpack.c.bf16 %v266_v11, %v266_v11  ;;  %v294_v8 = vld [vmem:[%s1053_s17 + $0x24] sm:$0x1] }
  0x2e   : > { %v257_v26 = vsel %vm200_vm2, %v256_v13, %v255_v21  ;;  %v478_v27 = vrot.slane %v475_v18, 7  ;;  %v480_v28 = vrot.slane %v476_v19, 6  ;;  %v271_v29 = vpack.c.bf16 %v267_v16, %v267_v16  ;;  %v295_v13 = vld [vmem:[%s1053_s17 + $0x34] sm:$0x1]  ;;  %v518_v18 = vld [vmem:[%s1053_s17 + $0xc] sm:$0x1] }
  0x2f   : > { %v258_v32 = vpack.c.b16 %v257_v26, %v257_v26  ;;  %v482_v33 = vrot.slane %v477_v22, 5  ;;  %v276_v34 = vunpack.c.l.b16 %v268_v20  ;;  %v277_v35 = vunpack.c.l.b16 %v269_v23  ;;  %v519_v23 = vld [vmem:[%s1053_s17 + $0x1c] sm:$0x1] }
  0x30   : > { %v479_v37 = vsel %vm194_vm0, %v478_v27, %v474_v15  ;;  %v278_v38 = vunpack.c.l.b16 %v270_v24  ;;  %v279_v39 = vunpack.c.l.b16 %v271_v29  ;;  %v494_v40 = vpack.c.bf16 %v490_v25, %v490_v25  ;;  %v520_v24 = vld [vmem:[%s1053_s17 + $0x2c] sm:$0x1]  ;;  %v521_v29 = vld [vmem:[%s1053_s17 + $0x3c] sm:$0x1] }
  0x31   : > { %259 = vrot.lane.b32.xlu0 %v258_v32, %s999_s24  ;;  %v481_v41 = vsel %vm197_vm1, %v480_v28, %v479_v37  ;;  %v280_v42 = vrot.slane %v277_v35, 7  ;;  %v495_v43 = vpack.c.bf16 %v491_v30, %v491_v30  ;;  %v496_v44 = vpack.c.bf16 %v492_v31, %v492_v31 }
  0x32   : > { %v483_v46 = vsel %vm200_vm2, %v482_v33, %v481_v41  ;;  %v282_v47 = vrot.slane %v278_v38, 6  ;;  %v284_v48 = vrot.slane %v279_v39, 5  ;;  %v497_v49 = vpack.c.bf16 %v493_v36, %v493_v36  ;;  %v576_v38 = vld [vmem:[%s1053_s17 + $0xe] sm:$0x1] }
  0x33   : > { %v484_v52 = vpack.c.b16 %v483_v46, %v483_v46  ;;  %v281_v53 = vsel %vm194_vm0, %v280_v42, %v276_v34  ;;  %v502_v54 = vunpack.c.l.b16 %v494_v40  ;;  %v503_v55 = vunpack.c.l.b16 %v495_v43  ;;  %v577_v43 = vld [vmem:[%s1053_s17 + $0x1e] sm:$0x1] }
  0x34   : > { %v283_v57 = vsel %vm197_vm1, %v282_v47, %v281_v53  ;;  %v504_v58 = vunpack.c.l.b16 %v496_v44  ;;  %v505_v59 = vunpack.c.l.b16 %v497_v49  ;;  %v550_v60 = vpack.c.bf16 %v546_v45, %v546_v45  ;;  %v578_v44 = vld [vmem:[%s1053_s17 + $0x2e] sm:$0x1]  ;;  %v579_v49 = vld [vmem:[%s1053_s17 + $0x3e] sm:$0x1] }
  0x35   : > { %485 = vrot.lane.b32.xlu1 %v484_v52, %s1000_s25  ;;  %v285_v61 = vsel %vm200_vm2, %v284_v48, %v283_v57  ;;  %v506_v62 = vrot.slane %v503_v55, 7  ;;  %v551_v63 = vpack.c.bf16 %v547_v50, %v547_v50  ;;  %v552_v1 = vpack.c.bf16 %v548_v51, %v548_v51 }
  0x36   : > { %v286_v4 = vpack.c.b16 %v285_v61, %v285_v61  ;;  %v508_v5 = vrot.slane %v504_v58, 6  ;;  %v510_v6 = vrot.slane %v505_v59, 5  ;;  %v553_v7 = vpack.c.bf16 %v549_v56, %v549_v56  ;;  %v320_v58 = vld [vmem:[%s1053_s17 + $0x5] sm:$0x1] }
  0x37   : > { %v507_v9 = vsel %vm194_vm0, %v506_v62, %v502_v54  ;;  %v558_v10 = vunpack.c.l.b16 %v550_v60  ;;  %v559_v11 = vunpack.c.l.b16 %v551_v63  ;;  %v560_v12 = vunpack.c.l.b16 %v552_v1  ;;  %v321_v63 = vld [vmem:[%s1053_s17 + $0x15] sm:$0x1]  ;;  %v322_v1 = vld [vmem:[%s1053_s17 + $0x25] sm:$0x1] }
  0x38   : > { %287 = vrot.lane.b32.xlu0 %v286_v4, %s1001_s26  ;;  %v509_v14 = vsel %vm197_vm1, %v508_v5, %v507_v9  ;;  %v561_v15 = vunpack.c.l.b16 %v553_v7  ;;  %v296_v16 = vpack.c.bf16 %v292_v2, %v292_v2  ;;  %v297_v17 = vpack.c.bf16 %v293_v3, %v293_v3 }
  0x39   : > { %v511_v19 = vsel %vm200_vm2, %v510_v6, %v509_v14  ;;  %v562_v20 = vrot.slane %v559_v11, 7  ;;  %v564_v21 = vrot.slane %v560_v12, 6  ;;  %v298_v22 = vpack.c.bf16 %v294_v8, %v294_v8  ;;  %v323_v6 = vld [vmem:[%s1053_s17 + $0x35] sm:$0x1] }
  0x3a   : > { %v512_v25 = vpack.c.b16 %v511_v19, %v511_v19  ;;  %v566_v26 = vrot.slane %v561_v15, 5  ;;  %v299_v27 = vpack.c.bf16 %v295_v13, %v295_v13  ;;  %v304_v28 = vunpack.c.l.b16 %v296_v16  ;;  %v604_v15 = vld [vmem:[%s1053_s17 + $0xf] sm:$0x1]  ;;  %v605_v16 = vld [vmem:[%s1053_s17 + $0x1f] sm:$0x1] }
  0x3b   : > { %v563_v30 = vsel %vm194_vm0, %v562_v20, %v558_v10  ;;  %v305_v31 = vunpack.c.l.b16 %v297_v17  ;;  %v306_v32 = vunpack.c.l.b16 %v298_v22  ;;  %v522_v33 = vpack.c.bf16 %v518_v18, %v518_v18 }
  0x3c   : > { %513 = vrot.lane.b32.xlu1 %v512_v25, %s1002_s27  ;;  %v565_v34 = vsel %vm197_vm1, %v564_v21, %v563_v30  ;;  %v307_v35 = vunpack.c.l.b16 %v299_v27  ;;  %v523_v36 = vpack.c.bf16 %v519_v23, %v519_v23  ;;  %v524_v37 = vpack.c.bf16 %v520_v24, %v520_v24  ;;  %v606_v21 = vld [vmem:[%s1053_s17 + $0x2f] sm:$0x1] }
  0x3d   : > { %v567_v39 = vsel %vm200_vm2, %v566_v26, %v565_v34  ;;  %v308_v40 = vrot.slane %v305_v31, 7  ;;  %v310_v41 = vrot.slane %v306_v32, 6  ;;  %v525_v42 = vpack.c.bf16 %v521_v29, %v521_v29  ;;  %v607_v26 = vld [vmem:[%s1053_s17 + $0x3f] sm:$0x1] }
  0x3e   : > { %v568_v45 = vpack.c.b16 %v567_v39, %v567_v39  ;;  %v312_v46 = vrot.slane %v307_v35, 5  ;;  %v530_v47 = vunpack.c.l.b16 %v522_v33  ;;  %v531_v48 = vunpack.c.l.b16 %v523_v36 }
  0x3f   : > { %v309_v50 = vsel %vm194_vm0, %v308_v40, %v304_v28  ;;  %v532_v51 = vunpack.c.l.b16 %v524_v37  ;;  %v533_v52 = vunpack.c.l.b16 %v525_v42  ;;  %v580_v53 = vpack.c.bf16 %v576_v38, %v576_v38 }
  0x40   : > { %569 = vrot.lane.b32.xlu0 %v568_v45, %s1003_s28  ;;  %v311_v54 = vsel %vm197_vm1, %v310_v41, %v309_v50  ;;  %v534_v55 = vrot.slane %v531_v48, 7  ;;  %v581_v56 = vpack.c.bf16 %v577_v43, %v577_v43  ;;  %v582_v57 = vpack.c.bf16 %v578_v44, %v578_v44 }
  0x41   : > { %v313_v59 = vsel %vm200_vm2, %v312_v46, %v311_v54  ;;  %v536_v60 = vrot.slane %v532_v51, 6  ;;  %v538_v61 = vrot.slane %v533_v52, 5  ;;  %v583_v62 = vpack.c.bf16 %v579_v49, %v579_v49 }
  0x42   : > { %v314_v2 = vpack.c.b16 %v313_v59, %v313_v59  ;;  %v535_v3 = vsel %vm194_vm0, %v534_v55, %v530_v47  ;;  %v588_v4 = vunpack.c.l.b16 %v580_v53  ;;  %v589_v5 = vunpack.c.l.b16 %v581_v56  ;;  %v1171_v53 = vld [vmem:[#allocation2 + $0x18] sm:$0xff] }
  0x43   : > { %v537_v7 = vsel %vm197_vm1, %v536_v60, %v535_v3  ;;  %v590_v8 = vunpack.c.l.b16 %v582_v57  ;;  %v591_v9 = vunpack.c.l.b16 %v583_v62  ;;  %v324_v10 = vpack.c.bf16 %v320_v58, %v320_v58 }
  0x44   : > { %315 = vrot.lane.b32.xlu1 %v314_v2, %s1004_s29  ;;  %v539_v11 = vsel %vm200_vm2, %v538_v61, %v537_v7  ;;  %v592_v12 = vrot.slane %v589_v5, 7  ;;  %v325_v13 = vpack.c.bf16 %v321_v63, %v321_v63  ;;  %v326_v14 = vpack.c.bf16 %v322_v1, %v322_v1 }
  0x45   : > { %v540_v17 = vpack.c.b16 %v539_v11, %v539_v11  ;;  %v594_v18 = vrot.slane %v590_v8, 6  ;;  %v596_v19 = vrot.slane %v591_v9, 5  ;;  %v327_v20 = vpack.c.bf16 %v323_v6, %v323_v6 }
  0x46   : > { %v593_v22 = vsel %vm194_vm0, %v592_v12, %v588_v4  ;;  %v332_v23 = vunpack.c.l.b16 %v324_v10  ;;  %v333_v24 = vunpack.c.l.b16 %v325_v13  ;;  %v334_v25 = vunpack.c.l.b16 %v326_v14  ;;  %v1212_v10 = vld [vmem:[%s1261_s1] sm:$0xff] }
  0x47   : > { %541 = vrot.lane.b32.xlu0 %v540_v17, %s1005_s30  ;;  %v595_v27 = vsel %vm197_vm1, %v594_v18, %v593_v22  ;;  %v335_v28 = vunpack.c.l.b16 %v327_v20  ;;  %v608_v29 = vpack.c.bf16 %v604_v15, %v604_v15  ;;  %v609_v30 = vpack.c.bf16 %v605_v16, %v605_v16  ;;  %v633_v12 = vld [vmem:[%s1262_s2] sm:$0xff] }
  0x48   : > { %v597_v31 = vsel %vm200_vm2, %v596_v19, %v595_v27  ;;  %v336_v32 = vrot.slane %v333_v24, 7  ;;  %v338_v33 = vrot.slane %v334_v25, 6  ;;  %v610_v34 = vpack.c.bf16 %v606_v21, %v606_v21 }
  0x49   : > { %v598_v35 = vpack.c.b16 %v597_v31, %v597_v31  ;;  %v340_v36 = vrot.slane %v335_v28, 5  ;;  %v611_v37 = vpack.c.bf16 %v607_v26, %v607_v26  ;;  %v616_v39 = vunpack.c.l.b16 %v608_v29 }
  0x4a   : > { %v337_v38 = vsel %vm194_vm0, %v336_v32, %v332_v23  ;;  %v617_v40 = vunpack.c.l.b16 %v609_v30  ;;  %v618_v41 = vunpack.c.l.b16 %v610_v34  ;;  %v940_v11 = vcombine.high %v1212_v10, %v1212_v10 }
  0x4b   : > { %599 = vrot.lane.b32.xlu1 %v598_v35, %s1006_s4  ;;  %v339_v42 = vsel %vm197_vm1, %v338_v33, %v337_v38  ;;  %v619_v43 = vunpack.c.l.b16 %v611_v37 }
  0x4c   : > { %v341_v44 = vsel %vm200_vm2, %v340_v36, %v339_v42  ;;  %v620_v45 = vrot.slane %v617_v40, 7  ;;  %v622_v46 = vrot.slane %v618_v41, 6 }
  0x4d   : > { %v342_v47 = vpack.c.b16 %v341_v44, %v341_v44  ;;  %v624_v48 = vrot.slane %v619_v43, 5 }
  0x4e   : > { %v621_v49 = vsel %vm194_vm0, %v620_v45, %v616_v39  ;;  %vm544_vm0 = vcmask 1001304  }
  0x4f   : > { %343 = vrot.lane.b32.xlu0 %v342_v47, %s1007_s5  ;;  %v623_v50 = vsel %vm197_vm1, %v622_v46, %v621_v49  ;;  %vm572_vm1 = vcmask 1042408  }
  0x50   : > { %v625_v51 = vsel %vm200_vm2, %v624_v48, %v623_v50  ;;  %vm602_vm2 = vcmask 246904  }
  0x51   : > { %v626_v52 = vpack.c.b16 %v625_v51, %v625_v51  ;;  %v939_v51 = vcombine.low %v1212_v10, %v1212_v10 }
  0x53   : > { %627 = vrot.lane.b32.xlu1 %v626_v52, %s1008_s6 }
  0x57   : > { %648 = vrot.lane.b32.xlu1 %v1171_v53, %s993_s18 }
  0x5b   : > { %663 = vrot.lane.b32.xlu1 %v1171_v53, %s1009_s7 }
  0x5f   : > { %678 = vrot.lane.b32.xlu1 %v1171_v53, %s1010_s8 }
  0x63   : > { %693 = vrot.lane.b32.xlu1 %v1171_v53, %s1007_s5 }
  0x67   : > { %708 = vrot.lane.b32.xlu1 %v1171_v53, %s1011_s9 }
  0x6b   : > { %723 = vrot.lane.b32.xlu1 %v1171_v53, %s1012_s10 }
  0x6f   : > { %738 = vrot.lane.b32.xlu1 %v1171_v53, %s1004_s29 }
  0x8e   : > { %v372_v54 = vpop.permute.xlu0 %371 }
  0x8f   : > { %377 = vst.msk [vmem:[#allocation2 + $0x8] sm:$0x3] %vm376_vm4, %v372_v54  ;;  %v204_v55 = vpop.permute.xlu1 %203  ;;  %vm374_vm4 = vcmask 1042424  }
  0x90   : > { %207 = vst.msk [vmem:[#allocation2] sm:$0x3] %vm206_vm5, %v204_v55  ;;  %vm630_vm5 = vcmask 394504  }
  0x94   : > { %v402_v56 = vpop.permute.xlu0 %401 }
  0x95   : > { %405 = vst.msk [vmem:[#allocation2 + $0x8] sm:$0x3] %vm404_vm6, %v402_v56  ;;  %vm773_vm6 = vcmask 130048  }
  0x96   : > { %942 = vmatprep.mubr.msk.bf16.mxu1 %vm773_vm6, %v940_v11  ;;  %941 = vmatprep.mubr.msk.bf16.mxu0 %vm773_vm6, %v940_v11 }
  0x98   : > { %v430_v57 = vpop.permute.xlu1 %429 }
  0x99   : > { %433 = vst.msk [vmem:[#allocation2 + $0x8] sm:$0x3] %vm432_vm7, %v430_v57  ;;  %vm650_vm7 = vcmask 1039360  }
  0x9b   : > { %v232_v58 = vpop.permute.xlu0 %231 }
  0x9c   : > { %235 = vst.msk [vmem:[#allocation2] sm:$0x3] %vm234_vm8, %v232_v58  ;;  %vm665_vm8 = vcmask 1031168  }
  0x9f   : > { %v458_v59 = vpop.permute.xlu1 %457 }
  0xa0   : > { %461 = vst.msk [vmem:[#allocation2 + $0x8] sm:$0x3] %vm460_vm9, %v458_v59  ;;  %vm680_vm9 = vcmask 900096  }
  0xa3   : > { %v260_v60 = vpop.permute.xlu0 %259 }
  0xa4   : > { %263 = vst.msk [vmem:[#allocation2] sm:$0x3] %vm262_vm10, %v260_v60  ;;  %vm695_vm10 = vcmask 891904  }
  0xa7   : > { %v486_v61 = vpop.permute.xlu1 %485 }
  0xa8   : > { %489 = vst.msk [vmem:[#allocation2 + $0x8] sm:$0x3] %vm488_vm11, %v486_v61  ;;  %vm710_vm11 = vcmask 883712  }
  0xaa   : > { %v288_v62 = vpop.permute.xlu0 %287 }
  0xab   : > { %291 = vst.msk [vmem:[#allocation2] sm:$0x3] %vm290_vm12, %v288_v62  ;;  %vm725_vm12 = vcmask 752640  }
  0xae   : > { %v514_v63 = vpop.permute.xlu1 %513 }
  0xaf   : > { %517 = vst.msk [vmem:[#allocation2 + $0x8] sm:$0x3] %vm516_vm13, %v514_v63  ;;  %vm740_vm13 = vcmask 744448  }
  0xb2   : > { %v570_v1 = vpop.permute.xlu0 %569 }
  0xb3   : > { %575 = vst.msk [vmem:[#allocation2 + $0x10] sm:$0x3] %vm574_vm14, %v570_v1  ;;  %vm755_vm14 = vcmask 736256  }
  0xb6   : > { %v316_v2 = vpop.permute.xlu1 %315 }
  0xb7   : > { %319 = vst.msk [vmem:[#allocation2] sm:$0x3] %vm318_vm15, %v316_v2 }
  0xb9   : > { %v542_v3 = vpop.permute.xlu0 %541 }
  0xba   : > { %545 = vst.msk [vmem:[#allocation2 + $0x8] sm:$0x3] %vm544_vm0, %v542_v3 }
  0xbb   : > { %573 = vst.msk [vmem:[#allocation2 + $0x8] sm:$0x3] %vm572_vm1, %v570_v1 }
  0xbd   : > { %v600_v4 = vpop.permute.xlu1 %599 }
  0xbe   : > { %603 = vst.msk [vmem:[#allocation2 + $0x10] sm:$0x3] %vm602_vm2, %v600_v4 }
  0xc1   : > { %v344_v5 = vpop.permute.xlu0 %343 }
  0xc2   : > { %347 = vst.msk [vmem:[#allocation2] sm:$0x3] %vm346_vm3, %v344_v5  ;;  %v635_v6 = vld [vmem:[#allocation2 + $0x8] sm:$0xff] }
  0xc3   : > { %375 = vst.msk [vmem:[#allocation2] sm:$0x3] %vm374_vm4, %v372_v54  ;;  %777 = vmatprep.subr.bf16.mxu0 %v635_v6 }
  0xc5   : > { %v628_v7 = vpop.permute.xlu1 %627 }
  0xc6   : > { %631 = vst.msk [vmem:[#allocation2 + $0x10] sm:$0x3] %vm630_vm5, %v628_v7 }
  0xc9   : > { %v649_v13 = vpop.permute.xlu1 %648 }
  0xca   : > { %v634_v8 = vld [vmem:[#allocation2] sm:$0xff] }
  0xcb   : > { %642 = vrot.lane.b32.xlu0 %v634_v8, %s993_s18  ;;  %778 = vmatpush1.bf16.msra.mxu0 %v634_v8 }
  0xcd   : > { %v636_v9 = vld [vmem:[#allocation2 + $0x10] sm:$0xff]  ;;  %v664_v14 = vpop.permute.xlu1 %663 }
  0xce   : > { %646 = vrot.lane.b32.xlu1 %v636_v9, %s993_s18  ;;  %819 = vmatpush1.bf16.msra.mxu1 %v636_v9 }
  0xcf   : > { %657 = vrot.lane.b32.xlu0 %v634_v8, %s1009_s7  ;;  %820 = vmatprep.subr.bf16.mxu1 %v992_v0 }
  0xd1   : > { %v679_v15 = vpop.permute.xlu1 %678 }
  0xd2   : > { %661 = vrot.lane.b32.xlu1 %v636_v9, %s1009_s7 }
  0xd3   : > { %672 = vrot.lane.b32.xlu0 %v634_v8, %s1010_s8 }
  0xd5   : > { %v694_v16 = vpop.permute.xlu1 %693 }
  0xd6   : > { %676 = vrot.lane.b32.xlu1 %v636_v9, %s1010_s8 }
  0xd7   : > { %687 = vrot.lane.b32.xlu0 %v634_v8, %s1007_s5 }
  0xd9   : > { %v709_v17 = vpop.permute.xlu1 %708 }
  0xda   : > { %691 = vrot.lane.b32.xlu1 %v636_v9, %s1007_s5 }
  0xdb   : > { %702 = vrot.lane.b32.xlu0 %v634_v8, %s1011_s9 }
  0xdd   : > { %v724_v18 = vpop.permute.xlu1 %723 }
  0xde   : > { %706 = vrot.lane.b32.xlu1 %v636_v9, %s1011_s9 }
  0xdf   : > { %717 = vrot.lane.b32.xlu0 %v634_v8, %s1012_s10 }
  0xe1   : > { %v739_v19 = vpop.permute.xlu1 %738 }
  0xe2   : > { %721 = vrot.lane.b32.xlu1 %v636_v9, %s1012_s10 }
  0xe3   : > { %732 = vrot.lane.b32.xlu0 %v634_v8, %s1004_s29 }
  0xe6   : > { %736 = vrot.lane.b32.xlu1 %v636_v9, %s1004_s29 }
  0xe7   : > { %644 = vrot.lane.b32.xlu0 %v635_v6, %s993_s18  ;;  %s950_s18 = smul.u32 12, %s1265_s13 }
  0xe9   : > { %s170_s21 = scalar_lea.vmem %s1263_s3, %s950_s18 }
  0xea   : > { %751 = vrot.lane.b32.xlu1 %v636_v9, %s1013_s11 }
  0xeb   : > { %659 = vrot.lane.b32.xlu0 %v635_v6, %s1009_s7 }
  0xee   : > { %753 = vrot.lane.b32.xlu1 %v1171_v53, %s1013_s11 }
  0xef   : > { %674 = vrot.lane.b32.xlu0 %v635_v6, %s1010_s8 }
  0xf3   : > { %689 = vrot.lane.b32.xlu0 %v635_v6, %s1007_s5 }
  0xf7   : > { %704 = vrot.lane.b32.xlu0 %v635_v6, %s1011_s9 }
  0xfb   : > { %719 = vrot.lane.b32.xlu0 %v635_v6, %s1012_s10 }
  0xff   : > { %734 = vrot.lane.b32.xlu0 %v635_v6, %s1004_s29 }
 0x103   : > { %749 = vrot.lane.b32.xlu0 %v635_v6, %s1013_s11 }
 0x107   : > { %747 = vrot.lane.b32.xlu0 %v634_v8, %s1013_s11 }
 0x10b   : > { %764 = vperm.xlu0 %981, %v633_v12  }
 0x13d   : > { %v643_v20 = vpop.permute.xlu0 %642 }
 0x140   : > { %v647_v21 = vpop.permute.xlu1 %646 }
 0x141   : > { %v653_v22 = vsel %vm650_vm7, %v647_v21, %v649_v13  ;;  %v658_v23 = vpop.permute.xlu0 %657 }
 0x142   : > { %821 = vmatpush1.bf16.msra.mxu1 %v653_v22 }
 0x143   : > { %822 = vmatprep.subr.bf16.mxu1 %v992_v0 }
 0x144   : > { %v662_v24 = vpop.permute.xlu1 %661 }
 0x145   : > { %v668_v25 = vsel %vm665_vm8, %v662_v24, %v664_v14  ;;  %v673_v26 = vpop.permute.xlu0 %672 }
 0x146   : > { %823 = vmatpush1.bf16.msra.mxu1 %v668_v25 }
 0x147   : > { %824 = vmatprep.subr.bf16.mxu1 %v992_v0 }
 0x148   : > { %v677_v27 = vpop.permute.xlu1 %676 }
 0x149   : > { %v683_v28 = vsel %vm680_vm9, %v677_v27, %v679_v15  ;;  %v688_v29 = vpop.permute.xlu0 %687 }
 0x14a   : > { %825 = vmatpush1.bf16.msra.mxu1 %v683_v28 }
 0x14b   : > { %826 = vmatprep.subr.bf16.mxu1 %v992_v0 }
 0x14c   : > { %v692_v30 = vpop.permute.xlu1 %691 }
 0x14d   : > { %v698_v31 = vsel %vm695_vm10, %v692_v30, %v694_v16  ;;  %v703_v32 = vpop.permute.xlu0 %702 }
 0x14e   : > { %827 = vmatpush1.bf16.msra.mxu1 %v698_v31 }
 0x14f   : > { %828 = vmatprep.subr.bf16.mxu1 %v992_v0 }
 0x150   : > { %v707_v33 = vpop.permute.xlu1 %706 }
 0x151   : > { %v713_v34 = vsel %vm710_vm11, %v707_v33, %v709_v17  ;;  %v718_v35 = vpop.permute.xlu0 %717 }
 0x152   : > { %829 = vmatpush1.bf16.msra.mxu1 %v713_v34 }
 0x153   : > { %830 = vmatprep.subr.bf16.mxu1 %v992_v0 }
 0x154   : > { %v722_v36 = vpop.permute.xlu1 %721 }
 0x155   : > { %v728_v37 = vsel %vm725_vm12, %v722_v36, %v724_v18  ;;  %v733_v38 = vpop.permute.xlu0 %732 }
 0x156   : > { %831 = vmatpush1.bf16.msra.mxu1 %v728_v37 }
 0x157   : > { %832 = vmatprep.subr.bf16.mxu1 %v992_v0 }
 0x158   : > { %v737_v39 = vpop.permute.xlu1 %736 }
 0x159   : > { %v743_v40 = vsel %vm740_vm13, %v737_v39, %v739_v19  ;;  %v645_v41 = vpop.permute.xlu0 %644 }
 0x15a   : > { %833 = vmatpush1.bf16.msra.mxu1 %v743_v40  ;;  %v652_v42 = vsel %vm650_vm7, %v645_v41, %v647_v21  ;;  %v651_v43 = vsel %vm650_vm7, %v643_v20, %v645_v41 }
 0x15b   : > { %779 = vmatprep.subr.bf16.mxu0 %v652_v42  ;;  %834 = vmatprep.subr.bf16.mxu1 %v992_v0 }
 0x15c   : > { %v752_v44 = vpop.permute.xlu1 %751  ;;  %780 = vmatpush1.bf16.msra.mxu0 %v651_v43 }
 0x15d   : > { %v660_v45 = vpop.permute.xlu0 %659 }
 0x15e   : > { %v667_v46 = vsel %vm665_vm8, %v660_v45, %v662_v24  ;;  %v666_v47 = vsel %vm665_vm8, %v658_v23, %v660_v45 }
 0x15f   : > { %781 = vmatprep.subr.bf16.mxu0 %v667_v46 }
 0x160   : > { %v754_v48 = vpop.permute.xlu1 %753  ;;  %782 = vmatpush1.bf16.msra.mxu0 %v666_v47 }
 0x161   : > { %v758_v49 = vsel %vm755_vm14, %v752_v44, %v754_v48  ;;  %v675_v50 = vpop.permute.xlu0 %674 }
 0x162   : > { %835 = vmatpush1.bf16.msra.mxu1 %v758_v49  ;;  %v682_v0 = vsel %vm680_vm9, %v675_v50, %v677_v27  ;;  %v681_v52 = vsel %vm680_vm9, %v673_v26, %v675_v50 }
 0x163   : > { %783 = vmatprep.subr.bf16.mxu0 %v682_v0 }
 0x164   : > { %784 = vmatpush1.bf16.msra.mxu0 %v681_v52 }
 0x165   : > { %v690_v53 = vpop.permute.xlu0 %689  ;;  %851 = vmatmul.mubr.bf16.vlgmr.msra.gmra.mrb[0].mxu1 %v939_v51 }
 0x166   : > { %v697_v54 = vsel %vm695_vm10, %v690_v53, %v692_v30  ;;  %v696_v55 = vsel %vm695_vm10, %v688_v29, %v690_v53 }
 0x167   : > { %785 = vmatprep.subr.bf16.mxu0 %v697_v54 }
 0x168   : > { %786 = vmatpush1.bf16.msra.mxu0 %v696_v55 }
 0x169   : > { %v705_v56 = vpop.permute.xlu0 %704 }
 0x16a   : > { %v712_v57 = vsel %vm710_vm11, %v705_v56, %v707_v33  ;;  %v711_v58 = vsel %vm710_vm11, %v703_v32, %v705_v56 }
 0x16b   : > { %787 = vmatprep.subr.bf16.mxu0 %v712_v57 }
 0x16c   : > { %788 = vmatpush1.bf16.msra.mxu0 %v711_v58 }
 0x16d   : > { %v720_v59 = vpop.permute.xlu0 %719 }
 0x16e   : > { %v727_v60 = vsel %vm725_vm12, %v720_v59, %v722_v36  ;;  %v726_v61 = vsel %vm725_vm12, %v718_v35, %v720_v59 }
 0x16f   : > { %789 = vmatprep.subr.bf16.mxu0 %v727_v60 }
 0x170   : > { %790 = vmatpush1.bf16.msra.mxu0 %v726_v61 }
 0x171   : > { %v735_v62 = vpop.permute.xlu0 %734 }
 0x172   : > { %v742_v63 = vsel %vm740_vm13, %v735_v62, %v737_v39  ;;  %v741_v1 = vsel %vm740_vm13, %v733_v38, %v735_v62 }
 0x173   : > { %791 = vmatprep.subr.bf16.mxu0 %v742_v63 }
 0x174   : > { %792 = vmatpush1.bf16.msra.mxu0 %v741_v1 }
 0x175   : > { %v750_v2 = vpop.permute.xlu0 %749 }
 0x176   : > { %v757_v3 = vsel %vm755_vm14, %v750_v2, %v752_v44 }
 0x177   : > { %793 = vmatprep.subr.bf16.mxu0 %v757_v3 }
 0x179   : > { %v748_v4 = vpop.permute.xlu0 %747 }
 0x17a   : > { %v756_v5 = vsel %vm755_vm14, %v748_v4, %v750_v2 }
 0x17b   : > { %794 = vmatpush1.bf16.msra.mxu0 %v756_v5 }
 0x17e   : > { %810 = vmatmul.mubr.bf16.vlgmr.msra.gmra.mrb[0].mxu0 %v939_v51 }
 0x18a   : > { %v765_v6 = vpop.permute.xlu0 %764 }
 0x238   : > { %v852_v7 = vpop.f32.mrb[0].mxu1 }
 0x239   : > { %v854_v8 = vpop.f32.mrb[1].mxu1  ;;  %v853_v9 = vadd.f32 %v852_v7, %v765_v6 }
 0x23a   : > { %v855_v10 = vpop.f32.mrb[2].mxu1 }
 0x23b   : > { %v860_v11 = vmax.f32 %v853_v9, 0.0  ;;  %v856_v12 = vpop.f32.mrb[3].mxu1 }
 0x23d   : > { %v949_v13 = vpack.c.bf16 %v860_v11, %v860_v11 }
 0x23f   : > { %875 = vst [vmem:[%s170_s21 + $0x8] sm:$0xf] %v949_v13 }
 0x251   : > { %v811_v14 = vpop.f32.mrb[0].mxu0 }
 0x252   : > { %v812_v15 = vadd.f32 %v811_v14, %v765_v6  ;;  %v813_v16 = vpop.f32.mrb[1].mxu0 }
 0x253   : > { %v814_v17 = vadd.f32 %v813_v16, %v765_v6  ;;  %v815_v18 = vpop.f32.mrb[2].mxu0 }
 0x254   : > { %v858_v19 = vmax.f32 %v812_v15, 0.0  ;;  %v816_v20 = vpop.f32.mrb[3].mxu0 }
 0x255   : > { %v859_v21 = vmax.f32 %v814_v17, 0.0 }
 0x257   : > { %v948_v22 = vpack.c.bf16 %v859_v21, %v858_v19 }
 0x259   : > { %874 = vst [vmem:[%s170_s21] sm:$0xff] %v948_v22 }
 0x25a PF: > { %s13_s12 = sadd.s32 1, %s990_s12  }
 0x25b   : > { %p10_p4 = scmp.ge.s32.totalorder %s13_s12, 4  }
 0x25d   :  { %12 = sbr.rel (!%p10_p4) target bundleno = 1 (0x1), region = 62 }

</bundles_post_ra>
